<compile_context>
chip_gen: v7x
topology: tpu7x:2x2x1
jax: 0.10.0
libtpu: 0.0.40
codegen_flags: <defaults>
</compile_context>

<pallas_src>
import functools

import jax
import jax.numpy as jnp
from jax.experimental import pallas as pl
from jax.experimental.pallas import tpu as pltpu

LN_EPS = 1e-5
NEG_INF = -1e9
# Explicit scoped-VMEM limit: > v5e/v6e defaults (16/32 MiB), < v7x physical
# 64 MiB with headroom.
VMEM_LIMIT_BYTES = 56 * 1024 * 1024


# ----------------------------------------------------------------------------
# helpers
# ----------------------------------------------------------------------------
def _row_tile(m, pref=512):
    """Row tile: 8-aligned, <= pref; rows are padded up to a tile multiple."""
    if m <= pref:
        return ((m + 7) // 8) * 8
    return pref


def _pad_rows(a, tm):
    """Pad the leading (row) dim up to a multiple of tm."""
    pad = (-a.shape[0]) % tm
    if pad:
        a = jnp.pad(a, ((0, pad), (0, 0)))
    return a


def _seq_tile(s, pref=512):
    """Sequence tile: full when small, else a 128-multiple divisor of s."""
    if s <= pref:
        return s
    t = pref
    while t >= 128:
        if s % t == 0:
            return t
        t -= 128
    return s


@functools.lru_cache(maxsize=1)
def _buffered_one_supported():
    """True if this jax build accepts pipeline_mode=pl.Buffered(1) on TPU."""
    try:
        mode = pl.Buffered(1)

        def k(x_ref, o_ref):
            o_ref[...] = x_ref[...] * 2.0

        f = pl.pallas_call(
            k,
            grid=(2,),
            in_specs=[pl.BlockSpec((8, 128), lambda i: (0, 0), pipeline_mode=mode)],
            out_specs=pl.BlockSpec((8, 128), lambda i: (i, 0)),
            out_shape=jax.ShapeDtypeStruct((16, 128), jnp.float32),
        )
        jax.block_until_ready(f(jnp.ones((8, 128), jnp.float32)))
        return True
    except Exception:  # pragma: no cover - fallback path
        return False


def _weight_spec(shape, index_map):
    """BlockSpec for a grid-invariant weight; single-buffered when supported."""
    if _buffered_one_supported():
        return pl.BlockSpec(shape, index_map, pipeline_mode=pl.Buffered(1))
    return pl.BlockSpec(shape, index_map)


def _ln_f32(y, g, b):
    """LayerNorm over the last dim; y is f32, returns f32."""
    mu = jnp.mean(y, axis=-1, keepdims=True)
    var = jnp.mean(jnp.square(y - mu), axis=-1, keepdims=True)
    return (y - mu) * jax.lax.rsqrt(var + LN_EPS) * g.astype(jnp.float32) + b.astype(
        jnp.float32
    )


# ----------------------------------------------------------------------------
# Pallas kernels
# ----------------------------------------------------------------------------
def _qkv_kernel(x_ref, wq_ref, bq_ref, wk_ref, bk_ref, wv_ref, bv_ref,
                q_ref, kT_ref, v_ref):
    """Fused Q/K/V projection; K is written pre-transposed ([H, S_tile])."""
    x = x_ref[0]  # [TS, H] bf16 straight into the MXU
    q = jnp.dot(x, wq_ref[...], preferred_element_type=jnp.float32)
    q_ref[0] = (q + bq_ref[...].astype(jnp.float32)).astype(q_ref.dtype)
    k = jnp.dot(x, wk_ref[...], preferred_element_type=jnp.float32)
    k = k + bk_ref[...].astype(jnp.float32)
    # One f32 transpose here (XLU is otherwise idle in this MXU-bound kernel);
    # the attention kernel then contracts K's sublane dim with no implicit
    # per-head transpose.
    kT_ref[0] = k.T.astype(kT_ref.dtype)
    v = jnp.dot(x, wv_ref[...], preferred_element_type=jnp.float32)
    v_ref[0] = (v + bv_ref[...].astype(jnp.float32)).astype(v_ref.dtype)


def qkv_projection(x, wq, bq, wk, bk, wv, bv):
    """x: [B, S, H] -> q [B,S,H], kT [B,H,S], v [B,S,H]; one kernel launch."""
    B, S, H = x.shape
    TS = _seq_tile(S)
    grid = (B, S // TS)

    def wspec(kdim, ndim):
        return _weight_spec((kdim, ndim), lambda b, st: (0, 0))

    def bspec(ndim):
        return pl.BlockSpec((1, ndim), lambda b, st: (0, 0))

    return pl.pallas_call(
        _qkv_kernel,
        grid=grid,
        in_specs=[
            pl.BlockSpec((1, TS, H), lambda b, st: (b, st, 0)),
            wspec(H, H), bspec(H),
            wspec(H, H), bspec(H),
            wspec(H, H), bspec(H),
        ],
        out_specs=(
            pl.BlockSpec((1, TS, H), lambda b, st: (b, st, 0)),
            pl.BlockSpec((1, H, TS), lambda b, st: (b, 0, st)),
            pl.BlockSpec((1, TS, H), lambda b, st: (b, st, 0)),
        ),
        out_shape=(
            jax.ShapeDtypeStruct((B, S, H), x.dtype),
            jax.ShapeDtypeStruct((B, H, S), x.dtype),
            jax.ShapeDtypeStruct((B, S, H), x.dtype),
        ),
        compiler_params=pltpu.CompilerParams(
            dimension_semantics=("parallel", "parallel"),
            vmem_limit_bytes=VMEM_LIMIT_BYTES,
        ),
    )(x, wq, bq.reshape(1, H), wk, bk.reshape(1, H), wv, bv.reshape(1, H))


def _mha_kernel(q_ref, kT_ref, v_ref, *rest, num_heads, has_mask):
    """One (batch, q-tile) per grid step; all heads processed inside the step.

    The 1/sqrt(head_dim) scale is folded into the Q projection weights, K is
    pre-transposed, and each head's context is stored directly into its lane
    slice of the output (no concatenate of all heads).
    """
    if has_mask:
        m_ref, o_ref = rest
    else:
        (o_ref,) = rest
    q = q_ref[0]    # [TQ, D]
    kT = kT_ref[0]  # [D, Tk]
    v = v_ref[0]    # [Tk, D]
    D = q.shape[-1]
    Dh = D // num_heads

    neg = None
    if has_mask:
        # additive padding bias built in-kernel from the [1, Tk] mask (f32)
        neg = (1.0 - m_ref[0].astype(jnp.float32)) * NEG_INF  # [1, Tk]

    for h in range(num_heads):
        lo = h * Dh
        s = jnp.dot(q[:, lo:lo + Dh], kT[lo:lo + Dh, :],
                    preferred_element_type=jnp.float32)        # [TQ, Tk]
        if neg is not None:
            s = s + neg
        s = s - jnp.max(s, axis=-1, keepdims=True)
        p = jnp.exp(s)
        p = p * pl.reciprocal(jnp.sum(p, axis=-1, keepdims=True), approx=True)
        ctx = jnp.dot(p.astype(v.dtype), v[:, lo:lo + Dh],
                      preferred_element_type=jnp.float32)
        o_ref[0, :, lo:lo + Dh] = ctx.astype(o_ref.dtype)      # per-head store


def multi_head_attention(q, kT, v, mask, num_heads):
    """q: [B, Tq, D], kT: [B, D, Tk], v: [B, Tk, D], mask: [B, 1, Tk] or None."""
    B, Tq, D = q.shape
    Tk = v.shape[1]
    TQ = _seq_tile(Tq)
    has_mask = mask is not None

    in_specs = [
        pl.BlockSpec((1, TQ, D), lambda b, qt: (b, qt, 0)),
        pl.BlockSpec((1, D, Tk), lambda b, qt: (b, 0, 0)),
        pl.BlockSpec((1, Tk, D), lambda b, qt: (b, 0, 0)),
    ]
    args = [q, kT, v]
    if has_mask:
        in_specs.append(pl.BlockSpec((1, 1, Tk), lambda b, qt: (b, 0, 0)))
        args.append(mask.astype(jnp.float32))

    return pl.pallas_call(
        functools.partial(_mha_kernel, num_heads=num_heads, has_mask=has_mask),
        grid=(B, Tq // TQ),
        in_specs=in_specs,
        out_specs=pl.BlockSpec((1, TQ, D), lambda b, qt: (b, qt, 0)),
        out_shape=jax.ShapeDtypeStruct((B, Tq, D), q.dtype),
        compiler_params=pltpu.CompilerParams(
            dimension_semantics=("parallel", "parallel"),
            vmem_limit_bytes=VMEM_LIMIT_BYTES,
        ),
    )(*args)


def _lin_res_ln_kernel(x_ref, w_ref, b_ref, r_ref, g_ref, be_ref, o_ref):
    """LayerNorm(x @ w + b + residual) in one pass."""
    y = jnp.dot(x_ref[...], w_ref[...], preferred_element_type=jnp.float32)
    y = y + b_ref[...].astype(jnp.float32) + r_ref[...].astype(jnp.float32)
    o_ref[...] = _ln_f32(y, g_ref[...], be_ref[...]).astype(o_ref.dtype)


def linear_residual_ln(x, w, b, res, gamma, beta):
    M, K = x.shape
    N = w.shape[1]
    TM = _row_tile(M)
    xp = _pad_rows(x, TM)
    rp = _pad_rows(res, TM)
    Mp = xp.shape[0]
    out = pl.pallas_call(
        _lin_res_ln_kernel,
        grid=(Mp // TM,),
        in_specs=[
            pl.BlockSpec((TM, K), lambda i: (i, 0)),
            _weight_spec((K, N), lambda i: (0, 0)),
            pl.BlockSpec((1, N), lambda i: (0, 0)),
            pl.BlockSpec((TM, N), lambda i: (i, 0)),
            pl.BlockSpec((1, N), lambda i: (0, 0)),
            pl.BlockSpec((1, N), lambda i: (0, 0)),
        ],
        out_specs=pl.BlockSpec((TM, N), lambda i: (i, 0)),
        out_shape=jax.ShapeDtypeStruct((Mp, N), x.dtype),
        compiler_params=pltpu.CompilerParams(
            dimension_semantics=("parallel",),
            vmem_limit_bytes=VMEM_LIMIT_BYTES,
        ),
    )(xp, w, b.reshape(1, N), rp, gamma.reshape(1, N), beta.reshape(1, N))
    return out[:M]


def _ffn_ln_kernel(x_ref, wi_ref, bi_ref, wo_ref, bo_ref, g_ref, be_ref, o_ref):
    """LayerNorm(gelu(x @ wi + bi) @ wo + bo + x) in one pass (whole FFN)."""
    x = x_ref[...]
    h = jnp.dot(x, wi_ref[...], preferred_element_type=jnp.float32)
    h = h + bi_ref[...].astype(jnp.float32)
    # GELU in the activation dtype (bf16 halves VPU/EUP pressure on v6e/v7x;
    # the result feeds the second bf16 matmul anyway).
    # TODO(synk): HF RoBERTa uses exact erf-GELU; tanh approximation here.
    # TODO(synk): on v5e (no bf16 VALU/EUP) keeping this in f32 is preferable.
    h = jax.nn.gelu(h.astype(x.dtype), approximate=True)
    y = jnp.dot(h, wo_ref[...], preferred_element_type=jnp.float32)
    y = y + bo_ref[...].astype(jnp.float32) + x.astype(jnp.float32)
    o_ref[...] = _ln_f32(y, g_ref[...], be_ref[...]).astype(o_ref.dtype)


def ffn_ln(x, wi, bi, wo, bo, gamma, beta):
    M, H = x.shape
    I = wi.shape[1]
    TM = _row_tile(M)
    xp = _pad_rows(x, TM)
    Mp = xp.shape[0]
    out = pl.pallas_call(
        _ffn_ln_kernel,
        grid=(Mp // TM,),
        in_specs=[
            pl.BlockSpec((TM, H), lambda i: (i, 0)),
            _weight_spec((H, I), lambda i: (0, 0)),   # single-buffered weight
            pl.BlockSpec((1, I), lambda i: (0, 0)),
            _weight_spec((I, H), lambda i: (0, 0)),   # single-buffered weight
            pl.BlockSpec((1, H), lambda i: (0, 0)),
            pl.BlockSpec((1, H), lambda i: (0, 0)),
            pl.BlockSpec((1, H), lambda i: (0, 0)),
        ],
        out_specs=pl.BlockSpec((TM, H), lambda i: (i, 0)),
        out_shape=jax.ShapeDtypeStruct((Mp, H), x.dtype),
        compiler_params=pltpu.CompilerParams(
            dimension_semantics=("parallel",),
            vmem_limit_bytes=VMEM_LIMIT_BYTES,
        ),
    )(xp, wi, bi.reshape(1, I), wo, bo.reshape(1, H), gamma.reshape(1, H),
      beta.reshape(1, H))
    return out[:M]


def _ln_kernel(x_ref, g_ref, b_ref, o_ref):
    o_ref[...] = _ln_f32(
        x_ref[...].astype(jnp.float32), g_ref[...], b_ref[...]
    ).astype(o_ref.dtype)


def layernorm(x, gamma, beta):
    M, D = x.shape
    TM = _row_tile(M)
    xp = _pad_rows(x, TM)
    Mp = xp.shape[0]
    out = pl.pallas_call(
        _ln_kernel,
        grid=(Mp // TM,),
        in_specs=[
            pl.BlockSpec((TM, D), lambda i: (i, 0)),
            pl.BlockSpec((1, D), lambda i: (0, 0)),
            pl.BlockSpec((1, D), lambda i: (0, 0)),
        ],
        out_specs=pl.BlockSpec((TM, D), lambda i: (i, 0)),
        out_shape=jax.ShapeDtypeStruct((Mp, D), x.dtype),
        compiler_params=pltpu.CompilerParams(
            dimension_semantics=("parallel",),
            vmem_limit_bytes=VMEM_LIMIT_BYTES,
        ),
    )(xp, gamma.reshape(1, D), beta.reshape(1, D))
    return out[:M]


def _combiner_kernel(x_ref, st_ref, pw_ref, pb_ref,
                     wq_ref, bq_ref, wk_ref, bk_ref, wv_ref, bv_ref,
                     wo_ref, bo_ref, o_ref, *, num_heads):
    """Fused: tokens = x @ proj; q = sentence_token @ c_wq (scale folded);
    k/v = tokens @ c_wk/c_wv; Tq=1 multi-head attention; out = ctx @ c_wo."""
    x = x_ref[0]  # [S, H]
    tokens = jnp.dot(x, pw_ref[...], preferred_element_type=jnp.float32)
    tokens = (tokens + pb_ref[...].astype(jnp.float32)).astype(x.dtype)  # [S, D]

    k = jnp.dot(tokens, wk_ref[...], preferred_element_type=jnp.float32)
    k = k + bk_ref[...].astype(jnp.float32)                              # [S, D]
    v = jnp.dot(tokens, wv_ref[...], preferred_element_type=jnp.float32)
    v = v + bv_ref[...].astype(jnp.float32)                              # [S, D]
    q = jnp.dot(st_ref[...], wq_ref[...], preferred_element_type=jnp.float32)
    q = q + bq_ref[...].astype(jnp.float32)                              # [1, D]

    D = q.shape[-1]
    Dh = D // num_heads
    # TODO(synk): matches the original module -- the combiner runs with NO
    # key_padding_mask, so padded-token K/V rows participate in attention.
    ctx_heads = []
    for h in range(num_heads):
        lo = h * Dh
        s = jax.lax.dot_general(
            q[:, lo:lo + Dh], k[:, lo:lo + Dh], (((1,), (1,)), ((), ())),
            preferred_element_type=jnp.float32)          # [1, S]
        s = s - jnp.max(s, axis=-1, keepdims=True)
        p = jnp.exp(s)
        p = p / jnp.sum(p, axis=-1, keepdims=True)
        ctx_heads.append(
            jnp.dot(p, v[:, lo:lo + Dh], preferred_element_type=jnp.float32))
    ctx = jnp.concatenate(ctx_heads, axis=-1).astype(x.dtype)            # [1, D]

    out = jnp.dot(ctx, wo_ref[...], preferred_element_type=jnp.float32)
    out = out + bo_ref[...].astype(jnp.float32)
    o_ref[0] = out.astype(o_ref.dtype)


def sentence_combiner(x, sentence_token, pw, pb, wq, bq, wk, bk, wv, bv, wo, bo,
                      num_heads):
    """x: [B, S, H] encoder output -> [B, D]; one kernel launch, grid over B."""
    B, S, H = x.shape
    D = pw.shape[1]
    out = pl.pallas_call(
        functools.partial(_combiner_kernel, num_heads=num_heads),
        grid=(B,),
        in_specs=[
            pl.BlockSpec((1, S, H), lambda b: (b, 0, 0)),
            pl.BlockSpec((1, D), lambda b: (0, 0)),
            _weight_spec((H, D), lambda b: (0, 0)),
            pl.BlockSpec((1, D), lambda b: (0, 0)),
            _weight_spec((D, D), lambda b: (0, 0)),
            pl.BlockSpec((1, D), lambda b: (0, 0)),
            _weight_spec((D, D), lambda b: (0, 0)),
            pl.BlockSpec((1, D), lambda b: (0, 0)),
            _weight_spec((D, D), lambda b: (0, 0)),
            pl.BlockSpec((1, D), lambda b: (0, 0)),
            _weight_spec((D, D), lambda b: (0, 0)),
            pl.BlockSpec((1, D), lambda b: (0, 0)),
        ],
        out_specs=pl.BlockSpec((1, 1, D), lambda b: (b, 0, 0)),
        out_shape=jax.ShapeDtypeStruct((B, 1, D), x.dtype),
        compiler_params=pltpu.CompilerParams(
            dimension_semantics=("parallel",),
            vmem_limit_bytes=VMEM_LIMIT_BYTES,
        ),
    )(x, sentence_token, pw, pb.reshape(1, D), wq, bq.reshape(1, D),
      wk, bk.reshape(1, D), wv, bv.reshape(1, D), wo, bo.reshape(1, D))
    return out.reshape(B, D)


# ----------------------------------------------------------------------------
# Model (glue around the kernels)
# ----------------------------------------------------------------------------
def roberta_layer(x, mask3, p, n_heads):
    B, S, H = x.shape
    # fused Q/K/V projection: one kernel, shared activation read, K emitted
    # pre-transposed; the attention scale is already folded into wq/bq.
    q, kT, v = qkv_projection(
        x, p["wq"], p["bq"], p["wk"], p["bk"], p["wv"], p["bv"]
    )
    ctx = multi_head_attention(q, kT, v, mask3, n_heads)
    x2 = x.reshape(B * S, H)
    # attention-out projection + residual + LayerNorm fused
    h = linear_residual_ln(
        ctx.reshape(B * S, H), p["wo"], p["bo"], x2, p["ln1_g"], p["ln1_b"]
    )
    # full FFN (wi + GELU + wo2 + residual + LayerNorm) fused
    h = ffn_ln(h, p["wi"], p["bi"], p["wo2"], p["bo2"], p["ln2_g"], p["ln2_b"])
    return h.reshape(B, S, H)


def mdetr_roberta_forward(params, input_ids, cfg):
    B, S = input_ids.shape
    H = cfg["hidden"]

    # --- RoBERTa embeddings (gathers = glue) --------------------------------
    mask = (input_ids != cfg["pad_id"]).astype(jnp.float32)  # [B, S], 1 = keep
    mask_i = mask.astype(jnp.int32)
    pos_ids = jnp.cumsum(mask_i, axis=1) * mask_i + cfg["pad_id"]
    emb = (
        jnp.take(params["word_emb"], input_ids, axis=0)
        + jnp.take(params["pos_emb"], pos_ids, axis=0)
        + params["type_emb"][0][None, None, :]
    )
    x = layernorm(
        emb.reshape(B * S, H), params["emb_ln_g"], params["emb_ln_b"]
    ).reshape(B, S, H)

    # padding mask passed ONCE as [B, 1, S]; additive bias built inside kernel
    mask3 = mask[:, None, :]

    # --- RoBERTa encoder layers ---------------------------------------------
    for lp in params["layers"]:
        x = roberta_layer(x, mask3, lp, cfg["n_heads"])

    # --- linear projection + sentence token + MultiheadAttention combiner ----
    # fused into a single kernel (no [B*S, D] tokens round-trip to HBM).
    return sentence_combiner(
        x, params["sentence_token"],
        params["proj_w"], params["proj_b"],
        params["c_wq"], params["c_bq"],
        params["c_wk"], params["c_bk"],
        params["c_wv"], params["c_bv"],
        params["c_wo"], params["c_bo"],
        cfg["comb_heads"],
    )


# ----------------------------------------------------------------------------
# Deterministic synthetic parameter init (no checkpoint loading)
# ----------------------------------------------------------------------------
def init_params(key, cfg, dtype=jnp.bfloat16):
    H, I, D = cfg["hidden"], cfg["intermediate"], cfg["output_dim"]
    keys = iter(jax.random.split(key, 256))

    def nrm(shape):
        return (0.02 * jax.random.normal(next(keys), shape)).astype(dtype)

    params = {
        "word_emb": nrm((cfg["vocab"], H)),
        "pos_emb": nrm((cfg["max_pos"], H)),
        "type_emb": nrm((1, H)),
        "emb_ln_g": jnp.ones((H,), jnp.float32),
        "emb_ln_b": jnp.zeros((H,), jnp.float32),
        "proj_w": nrm((H, D)),
        "proj_b": nrm((D,)),
        "sentence_token": nrm((1, D)),
        "c_wq": nrm((D, D)), "c_bq": nrm((D,)),
        "c_wk": nrm((D, D)), "c_bk": nrm((D,)),
        "c_wv": nrm((D, D)), "c_bv": nrm((D,)),
        "c_wo": nrm((D, D)), "c_bo": nrm((D,)),
        "layers": [],
    }
    for _ in range(cfg["n_layers"]):
        params["layers"].append(
            {
                "wq": nrm((H, H)), "bq": nrm((H,)),
                "wk": nrm((H, H)), "bk": nrm((H,)),
                "wv": nrm((H, H)), "bv": nrm((H,)),
                "wo": nrm((H, H)), "bo": nrm((H,)),
                "ln1_g": jnp.ones((H,), jnp.float32),
                "ln1_b": jnp.zeros((H,), jnp.float32),
                "wi": nrm((H, I)), "bi": nrm((I,)),
                "wo2": nrm((I, H)), "bo2": nrm((H,)),
                "ln2_g": jnp.ones((H,), jnp.float32),
                "ln2_b": jnp.zeros((H,), jnp.float32),
            }
        )
    return params


def prepare_params(params, cfg):
    """Fold the 1/sqrt(head_dim) attention scale into Wq/bq (encoder + combiner)."""
    def scale(a, s):
        return (a.astype(jnp.float32) * s).astype(a.dtype)

    p = dict(params)
    enc_scale = 1.0 / float(cfg["hidden"] // cfg["n_heads"]) ** 0.5
    layers = []
    for lp in params["layers"]:
        lp = dict(lp)
        lp["wq"] = scale(lp["wq"], enc_scale)
        lp["bq"] = scale(lp["bq"], enc_scale)
        layers.append(lp)
    p["layers"] = layers

    comb_scale = 1.0 / float(cfg["output_dim"] // cfg["comb_heads"]) ** 0.5
    p["c_wq"] = scale(params["c_wq"], comb_scale)
    p["c_bq"] = scale(params["c_bq"], comb_scale)
    return p


if __name__ == "__main__":
    # TODO(synk): the HF tokenizer (string -> ids) and .pth checkpoint loading have
    # no Pallas equivalent; pre-tokenized ids + synthetic weights are used instead.
    cfg = dict(
        vocab=100,
        hidden=32,
        intermediate=64,
        n_layers=2,
        n_heads=4,       # RoBERTa-style encoder heads (hidden // heads = 8)
        output_dim=32,
        comb_heads=8,    # matches nn.MultiheadAttention(num_heads=8)
        max_pos=64,
        pad_id=1,
    )
    B, S = 2, 8

    key = jax.random.PRNGKey(0)
    k_param, k_ids = jax.random.split(key)
    params = prepare_params(init_params(k_param, cfg), cfg)

    input_ids = jax.random.randint(k_ids, (B, S), 3, cfg["vocab"], dtype=jnp.int32)
    # emulate padding='longest': pad the tail of the second sequence
    input_ids = input_ids.at[1, 6:].set(cfg["pad_id"])

    out = mdetr_roberta_forward(params, input_ids, cfg)
    out = jax.block_until_ready(out)

    assert out.shape == (B, cfg["output_dim"]), out.shape
    assert bool(jnp.all(jnp.isfinite(out.astype(jnp.float32))))
    print("KERNEL_OK")
</pallas_src>

<mosaic_0001>
module attributes {stable_mosaic.version = 11 : i64} {
  func.func @_ln_kernel(%arg0: i32, %arg1: memref<16x32xbf16, #tpu.memory_space<vmem>>, %arg2: memref<1x32xf32, #tpu.memory_space<vmem>>, %arg3: memref<1x32xf32, #tpu.memory_space<vmem>>, %arg4: memref<16x32xbf16, #tpu.memory_space<vmem>>) attributes {dimension_semantics = [#tpu.dimension_semantics<parallel>], iteration_bounds = array<i64: 1>, scalar_prefetch = 0 : i64, scratch_operands = 0 : i64, tpu.core_type = #tpu.core_type<tc>, window_params = [{transform_indices = @transform_0, window_bounds = array<i64: 16, 32>}, {pipeline_mode = #tpu.pipeline_mode<synchronous>, transform_indices = @transform_1, window_bounds = array<i64: 1, 32>}, {pipeline_mode = #tpu.pipeline_mode<synchronous>, transform_indices = @transform_2, window_bounds = array<i64: 1, 32>}, {transform_indices = @transform_3, window_bounds = array<i64: 16, 32>}]} {
    %c0 = arith.constant 0 : index
    %c0_0 = arith.constant 0 : index
    %0 = vector.load %arg1[%c0, %c0_0] : memref<16x32xbf16, #tpu.memory_space<vmem>>, vector<16x32xbf16>
    %1 = arith.extf %0 : vector<16x32xbf16> to vector<16x32xf32>
    %c0_1 = arith.constant 0 : index
    %c0_2 = arith.constant 0 : index
    %2 = vector.load %arg2[%c0_1, %c0_2] : memref<1x32xf32, #tpu.memory_space<vmem>>, vector<1x32xf32>
    %c0_3 = arith.constant 0 : index
    %c0_4 = arith.constant 0 : index
    %3 = vector.load %arg3[%c0_3, %c0_4] : memref<1x32xf32, #tpu.memory_space<vmem>>, vector<1x32xf32>
    %cst = arith.constant dense<0.000000e+00> : vector<16xf32>
    %4 = vector.multi_reduction <add>, %1, %cst [1] : vector<16x32xf32> to vector<16xf32>
    %5 = vector.shape_cast %4 : vector<16xf32> to vector<16x1xf32>
    %cst_5 = arith.constant 3.200000e+01 : f32
    %6 = vector.broadcast %cst_5 : f32 to vector<16x1xf32>
    %7 = arith.divf %5, %6 : vector<16x1xf32>
    %8 = vector.broadcast %7 : vector<16x1xf32> to vector<16x32xf32>
    %9 = arith.subf %1, %8 : vector<16x32xf32>
    %10 = arith.mulf %9, %9 : vector<16x32xf32>
    %cst_6 = arith.constant dense<0.000000e+00> : vector<16xf32>
    %11 = vector.multi_reduction <add>, %10, %cst_6 [1] : vector<16x32xf32> to vector<16xf32>
    %12 = vector.shape_cast %11 : vector<16xf32> to vector<16x1xf32>
    %cst_7 = arith.constant 3.200000e+01 : f32
    %13 = vector.broadcast %cst_7 : f32 to vector<16x1xf32>
    %14 = arith.divf %12, %13 : vector<16x1xf32>
    %15 = vector.broadcast %7 : vector<16x1xf32> to vector<16x32xf32>
    %16 = arith.subf %1, %15 : vector<16x32xf32>
    %cst_8 = arith.constant 9.99999974E-6 : f32
    %17 = vector.broadcast %cst_8 : f32 to vector<16x1xf32>
    %18 = arith.addf %14, %17 : vector<16x1xf32>
    %19 = math.rsqrt %18 : vector<16x1xf32>
    %20 = vector.broadcast %19 : vector<16x1xf32> to vector<16x32xf32>
    %21 = arith.mulf %16, %20 : vector<16x32xf32>
    %22 = vector.broadcast %2 : vector<1x32xf32> to vector<16x32xf32>
    %23 = arith.mulf %21, %22 : vector<16x32xf32>
    %24 = vector.broadcast %3 : vector<1x32xf32> to vector<16x32xf32>
    %25 = arith.addf %23, %24 : vector<16x32xf32>
    %26 = arith.truncf %25 : vector<16x32xf32> to vector<16x32xbf16>
    %c0_9 = arith.constant 0 : index
    %c0_10 = arith.constant 0 : index
    %27 = vector.load %arg4[%c0_9, %c0_10] : memref<16x32xbf16, #tpu.memory_space<vmem>>, vector<16x32xbf16>
    tpu.vector_store %arg4[%c0_9, %c0_10], %26 {strides = array<i32>} : memref<16x32xbf16, #tpu.memory_space<vmem>>, vector<16x32xbf16>,
    return
  }
  func.func @transform_0(%arg0: i32) -> (i32, i32) {
    %c0_i32 = arith.constant 0 : i32
    %c0_i32_0 = arith.constant 0 : i32
    return %arg0, %c0_i32 : i32, i32
  }
  func.func @transform_1(%arg0: i32) -> (i32, i32) {
    %c0_i32 = arith.constant 0 : i32
    %c0_i32_0 = arith.constant 0 : i32
    %c0_i32_1 = arith.constant 0 : i32
    return %c0_i32, %c0_i32_0 : i32, i32
  }
  func.func @transform_2(%arg0: i32) -> (i32, i32) {
    %c0_i32 = arith.constant 0 : i32
    %c0_i32_0 = arith.constant 0 : i32
    %c0_i32_1 = arith.constant 0 : i32
    return %c0_i32, %c0_i32_0 : i32, i32
  }
  func.func @transform_3(%arg0: i32) -> (i32, i32) {
    %c0_i32 = arith.constant 0 : i32
    %c0_i32_0 = arith.constant 0 : i32
    return %arg0, %c0_i32 : i32, i32
  }
}

</mosaic_0001>

<bundles_post_ra>
// kernel: tpu_custom_call.1
= control target key start
LH: loop header
LB: loop body
LE: loop exit
PB: predicated region body
PF: predicated region fallthrough
CT: control target
= control target key end

     0   :  { %8 = vsyncpa [#allocation3], 0  ;;  %s237_s0 = inlined_call_operand.hbm [shape: bf16[16,32], index: 0, kind: input, shape index: {}]   ;;  %s238_s1 = inlined_call_operand.vmem [shape: f32[1,32], index: 1, kind: input, shape index: {}]   ;;  %s239_s2 = inlined_call_operand.vmem [shape: f32[1,32], index: 2, kind: input, shape index: {}]   ;;  %s240_s3 = inlined_call_operand.hbm [shape: bf16[16,32], index: 3, kind: output, shape index: {}]  }
   0x1   :  { %9 = vsyncpa [#allocation4], 0  ;;  %s173_s12 = smov [#allocation2]   ;;  %s125_s16 = scalar_lea.hbm %s237_s0, 128 }
   0x2   :  { %s15_s13 = sshll.u32 %s173_s12, 4  ;;  %p126_p0 = scmp.ne.s32.totalorder %s237_s0, %s125_s16  ;;  %s16_s13 = int_to_ptr.vmem [resolvable:$true] %s15_s13 }
   0x3   :  { %p129_p1 = scmp.lt.u32.totalorder %s125_s16, %s237_s0 }
   0x5   :  { %p131_p2 = pnand %p129_p1, %p126_p0 }
   0x7   :  { %134 = shalt.err (!%p131_p2)
}
   0x8   :  { %s135_s21 = scalar_lea.vmem %s16_s13, 128  ;;  %p140_p4 = scmp.lt.s32.totalorder %s16_s13, %s16_s13 }
   0x9   :  { %p136_p3 = scmp.ne.s32.totalorder %s16_s13, %s135_s21  ;;  %p141_p5 = scmp.lt.s32.totalorder %s135_s21, %s135_s21 }
   0xb   :  { %p142_p6 = por %p141_p5, %p140_p4 }
   0xd   :  { %p143_p7 = pnand %p142_p6, %p136_p3 }
   0xf   :  { %146 = shalt.err (!%p143_p7)
}
  0x10   :  { %s174_s22 = smov 64   ;;  %s175_s23 = smov 4  }
  0x11   :  { %21 = dma.hbm_to_vmem [thread:$0]  %s237_s0, 128, %s16_s13, [#allocation3], %s174_s22, %s174_s22, %s175_s23  }
  0x12   :  { %169 = dma.done.wait [#allocation3], 128  }
  0x13   :  { %170 = vsyncadd [#allocation3], 4294967168  ;;  %v114_v0 = vld [vmem:[#allocation2] sm:$0xff]   ;;  %vm35_vm0 = vcmask 261120   ;;  %vm87_vm1 = vcmask 257024   ;;  %s176_s29 = smov [#allocation5]  }
  0x14   :  { %v115_v1 = vunpack.c.l.bf16 %v114_v0  ;;  %v116_v2 = vunpack.c.h.bf16 %v114_v0  ;;  %v107_v22 = vld [vmem:[%s238_s1] ss:$0 sm:$0xff]  ;;  %s95_s30 = sshll.u32 %s176_s29, 4  ;;  %s96_s30 = int_to_ptr.vmem [resolvable:$true] %s95_s30 }
  0x15   :  { %v108_v24 = vld [vmem:[%s239_s2] ss:$0 sm:$0xff]  ;;  %s147_s1 = scalar_lea.vmem %s96_s30, 128  ;;  %p152_p9 = scmp.lt.s32.totalorder %s96_s30, %s96_s30 }
  0x16   :  { %v36_v3 = vsel %vm35_vm0, %v115_v1, 0.0  ;;  %v39_v4 = vsel %vm35_vm0, %v116_v2, 0.0  ;;  %p148_p8 = scmp.ne.s32.totalorder %s96_s30, %s147_s1  ;;  %p153_p10 = scmp.lt.s32.totalorder %s147_s1, %s147_s1 }
  0x17   :  { %37 = vadd.xlane.f32.xlu0 %v36_v3 }
  0x18   :  { %p154_p11 = por %p153_p10, %p152_p9 }
  0x1a   :  { %p155_p12 = pnand %p154_p11, %p148_p8 }
  0x1b   :  { %40 = vadd.xlane.f32.xlu0 %v39_v4 }
  0xa4   :  { %v38_v5 = vpop.xlane.xlu0 %37 }
  0xa5   :  { %v43_v6 = vmul.f32 0.03125, %v38_v5 }
  0xa7   :  { %v45_v7 = vsub.f32 %v115_v1, %v43_v6 }
  0xa8   :  { %v41_v8 = vpop.xlane.xlu0 %40 }
  0xa9   :  { %v44_v9 = vmul.f32 0.03125, %v41_v8  ;;  %v47_v10 = vmul.f32 %v45_v7, %v45_v7 }
  0xab   :  { %v46_v11 = vsub.f32 %v116_v2, %v44_v9  ;;  %v49_v12 = vsel %vm35_vm0, %v47_v10, 0.0 }
  0xac   :  { %50 = vadd.xlane.f32.xlu1 %v49_v12 }
  0xad   :  { %v48_v13 = vmul.f32 %v46_v11, %v46_v11 }
  0xaf   :  { %v52_v14 = vsel %vm35_vm0, %v48_v13, 0.0 }
  0xb0   :  { %53 = vadd.xlane.f32.xlu1 %v52_v14 }
 0x139   :  { %v51_v15 = vpop.xlane.xlu1 %50 }
 0x13a   :  { %v55_v16 = vmul.f32 0.03125, %v51_v15 }
 0x13c   :  { %v57_v17 = vadd.f32 1e-05, %v55_v16 }
 0x13d   :  { %v54_v18 = vpop.xlane.xlu1 %53 }
 0x13e   :  { %121 = vrsqrt.f32 %v57_v17  ;;  %v56_v19 = vmul.f32 0.03125, %v54_v18 }
 0x140   :  { %v58_v20 = vadd.f32 1e-05, %v56_v19 }
 0x142   :  { %123 = vrsqrt.f32 %v58_v20 }
 0x148   :  { %v122_v21 = vpop.eup %121 }
 0x149   :  { %v61_v23 = vmul.f32 %v122_v21, %v45_v7 }
 0x14b   :  { %v69_v25 = vmul.f32 %v107_v22, %v61_v23 }
 0x14c   :  { %v124_v26 = vpop.eup %123 }
 0x14d   :  { %v62_v27 = vmul.f32 %v124_v26, %v46_v11  ;;  %v77_v28 = vadd.f32 %v108_v24, %v69_v25 }
 0x14f   :  { %v70_v29 = vmul.f32 %v107_v22, %v62_v27  ;;  %v111_v30 = vpack.c.bf16 %v77_v28, %v77_v28 }
 0x151   :  { %v78_v31 = vadd.f32 %v108_v24, %v70_v29  ;;  %88 = vst.msk [vmem:[#allocation5] sm:$0xf] %vm87_vm1, %v111_v30 }
 0x153   :  { %v112_v32 = vpack.c.bf16 %v78_v31, %v78_v31 }
 0x155   :  { %89 = vst.msk [vmem:[#allocation5 + $0x4] sm:$0xf] %vm87_vm1, %v112_v32 }
 0x156   :  { %158 = shalt.err (!%p155_p12)
}
 0x157   :  { %s159_s5 = scalar_lea.hbm %s240_s3, 128 }
 0x158   :  { %p160_p13 = scmp.ne.s32.totalorder %s240_s3, %s159_s5  ;;  %p163_p0 = scmp.lt.u32.totalorder %s159_s5, %s240_s3 }
 0x15a   :  { %p165_p1 = pnand %p163_p0, %p160_p13 }
 0x15c   :  { %168 = shalt.err (!%p165_p1)
}
 0x15d   :  { %101 = dma.vmem_to_hbm [thread:$0]  %s96_s30, 128, %s240_s3, [#allocation4], %s174_s22, %s174_s22, %s175_s23  }
 0x15e   :  { %171 = dma.done.wait [#allocation4], 128  }
 0x15f   :  { %172 = vsyncadd [#allocation4], 4294967168 }
 0x160   :  { %105 = vsyncpa [#allocation3], 1 }
 0x161   :  { %106 = vsyncpa [#allocation4], 1 }

</bundles_post_ra>
